<compile_context>
chip_gen: v5e
topology: v5e:2x2
jax: 0.10.0
libtpu: 0.0.40
codegen_flags: <defaults>
</compile_context>

<pallas_src>
import math
from functools import partial

import jax
import jax.numpy as jnp
from jax.experimental import pallas as pl
from jax.experimental.pallas import tpu as pltpu


def cross_attention_kernel(x_ref, enc_ref,
                           wq_ref, bq_ref,
                           wkv_ref, bkv_ref,
                           wp_ref, bp_ref,
                           o_ref, acc_ref, *, attn_dtype):
    """Grid step (i, h): batch-block i, head h.

    x_ref:   (Bb, T, C)      activations for this batch block
    enc_ref: (Bb, S, C)      encoder output for this batch block
    wq_ref:  (1, C, hd)      query weight for head h      (in, out) layout
    bq_ref:  (1, 1, hd)
    wkv_ref: (1, C, 2*hd)    fused [key | value] weight for head h
    bkv_ref: (1, 1, 2*hd)
    wp_ref:  (1, hd, C)      c_proj rows belonging to head h
    bp_ref:  (1, C)          c_proj bias (added once, at h == 0)
    o_ref:   (Bb, T, C)      output block (revisited across the head axis)
    acc_ref: (Bb*T, C) f32   VMEM accumulator for the output projection
    """
    Bb, T, C = x_ref.shape
    S = enc_ref.shape[1]
    hd = wq_ref.shape[-1]
    scale = 1.0 / math.sqrt(hd)
    h = pl.program_id(1)

    # Initialize the accumulator with the c_proj bias on the first head.
    @pl.when(h == 0)
    def _():
        acc_ref[...] = jnp.broadcast_to(bp_ref[...], (Bb * T, C)).astype(jnp.float32)

    # Flatten batch*seq onto the matmul M axis (fills MXU rows).
    x2d = x_ref[...].reshape(Bb * T, C)
    e2d = enc_ref[...].reshape(Bb * S, C)

    # Per-head projections: Q, and fused K|V as one (C, 2*hd) matmul.
    q = jnp.dot(x2d, wq_ref[0], preferred_element_type=jnp.float32) + bq_ref[0]
    kv = jnp.dot(e2d, wkv_ref[0], preferred_element_type=jnp.float32) + bkv_ref[0]
    k = kv[:, :hd]
    v = kv[:, hd:]

    # Batched (over Bb) attention for this head; bf16 MXU operands, f32 acc.
    qb = q.reshape(Bb, T, hd).astype(attn_dtype)
    kb = k.reshape(Bb, S, hd).astype(attn_dtype)
    vb = v.reshape(Bb, S, hd)

    att = jnp.einsum('btd,bsd->bts', qb, kb,
                     preferred_element_type=jnp.float32) * scale
    att = att - jnp.max(att, axis=-1, keepdims=True)
    p = jnp.exp(att)
    p = p * pl.reciprocal(jnp.sum(p, axis=-1, keepdims=True), approx=True)
    # TODO(synk): for large S, add a KV-tile grid axis ("arbitrary") with an
    # online softmax (running max/sum in scratch) instead of materializing
    # the full (T, S) score matrix.

    y = jnp.einsum('bts,bsd->btd', p.astype(attn_dtype), vb.astype(attn_dtype),
                   preferred_element_type=jnp.float32)          # (Bb, T, hd)

    # Fold this head's slice of the output projection straight into the
    # accumulator (replaces transpose + concat + one big matmul).
    acc_ref[...] += jnp.dot(y.reshape(Bb * T, hd), wp_ref[0],
                            preferred_element_type=jnp.float32)

    @pl.when(h == pl.num_programs(1) - 1)
    def _():
        o_ref[...] = acc_ref[...].reshape(Bb, T, C).astype(o_ref.dtype)


def cross_attention(x, encoder_output, params, n_head, *,
                    batch_block=None, attn_dtype=jnp.bfloat16):
    B, T, C = x.shape
    _, S, _ = encoder_output.shape
    assert C % n_head == 0
    hd = C // n_head
    wq, bq, wk, bk, wv, bv, wp, bp = params

    # Pick Bb so the projection matmuls see >= 128 rows where possible,
    # while evenly dividing B.
    if batch_block is None:
        batch_block = min(B, max(1, -(-128 // T)))
        while B % batch_block:
            batch_block -= 1
    Bb = batch_block
    assert B % Bb == 0

    # Host-side weight re-layout: head axis leading, so per-head weight tiles
    # are full in their trailing dims (clean, (8,128)-rule-compatible blocks)
    # and only one head's weights live in VMEM at a time.
    def per_head(w, b):   # (C, C) -> (n_head, C, hd); (1, C) -> (n_head, 1, hd)
        return (w.reshape(C, n_head, hd).transpose(1, 0, 2),
                b.reshape(1, n_head, hd).transpose(1, 0, 2))

    wq_h, bq_h = per_head(wq, bq)
    wk_h, bk_h = per_head(wk, bk)
    wv_h, bv_h = per_head(wv, bv)
    wkv_h = jnp.concatenate([wk_h, wv_h], axis=-1)    # (n_head, C, 2*hd)
    bkv_h = jnp.concatenate([bk_h, bv_h], axis=-1)    # (n_head, 1, 2*hd)
    wp_h = wp.reshape(n_head, hd, C)                  # c_proj rows per head
    bp2 = bp.reshape(1, C)

    kernel = partial(cross_attention_kernel, attn_dtype=attn_dtype)
    batch_map = lambda i, h: (i, 0, 0)
    head_map = lambda i, h: (h, 0, 0)

    return pl.pallas_call(
        kernel,
        out_shape=jax.ShapeDtypeStruct((B, T, C), x.dtype),
        grid=(B // Bb, n_head),
        in_specs=[
            pl.BlockSpec((Bb, T, C), batch_map),            # x
            pl.BlockSpec((Bb, S, C), batch_map),            # encoder_output
            pl.BlockSpec((1, C, hd), head_map),             # wq   (per head)
            pl.BlockSpec((1, 1, hd), head_map),             # bq
            pl.BlockSpec((1, C, 2 * hd), head_map),         # wkv  (fused K|V)
            pl.BlockSpec((1, 1, 2 * hd), head_map),         # bkv
            pl.BlockSpec((1, hd, C), head_map),             # wp rows (per head)
            pl.BlockSpec((1, C), lambda i, h: (0, 0)),      # bp
        ],
        out_specs=pl.BlockSpec((Bb, T, C), batch_map),
        scratch_shapes=[pltpu.VMEM((Bb * T, C), jnp.float32)],
        compiler_params=pltpu.CompilerParams(
            dimension_semantics=("parallel", "arbitrary"),
            vmem_limit_bytes=32 * 1024 * 1024),
    )(x, encoder_output, wq_h, bq_h, wkv_h, bkv_h, wp_h, bp2)


def cross_attention_ref(x, enc, params, n_head):
    """Pure-JAX f32 reference mirroring the PyTorch forward exactly."""
    wq, bq, wk, bk, wv, bv, wp, bp = params
    B, T, C = x.shape
    _, S, _ = enc.shape
    hd = C // n_head
    q = (x @ wq + bq).reshape(B, T, n_head, hd).transpose(0, 2, 1, 3)
    k = (enc @ wk + bk).reshape(B, S, n_head, hd).transpose(0, 2, 1, 3)
    v = (enc @ wv + bv).reshape(B, S, n_head, hd).transpose(0, 2, 1, 3)
    att = (q @ jnp.swapaxes(k, -2, -1)) * (1.0 / math.sqrt(hd))
    att = jax.nn.softmax(att, axis=-1)
    y = (att @ v).transpose(0, 2, 1, 3).reshape(B, T, C)
    return y @ wp + bp


if __name__ == "__main__":
    # Small, deterministic config: n_embd=32, n_head=4, T=8, S=16, B=2.
    B, T, S, C, n_head = 2, 8, 16, 32, 4

    key = jax.random.PRNGKey(0)
    keys = jax.random.split(key, 10)
    scale = 1.0 / math.sqrt(C)

    x = jax.random.normal(keys[0], (B, T, C), jnp.float32)
    enc = jax.random.normal(keys[1], (B, S, C), jnp.float32)

    # Deterministic "Linear" params; weights stored as (in, out) = W_pt.T,
    # biases as (1, C).
    params = (
        jax.random.normal(keys[2], (C, C), jnp.float32) * scale,   # wq
        jax.random.normal(keys[3], (1, C), jnp.float32) * scale,   # bq
        jax.random.normal(keys[4], (C, C), jnp.float32) * scale,   # wk
        jax.random.normal(keys[5], (1, C), jnp.float32) * scale,   # bk
        jax.random.normal(keys[6], (C, C), jnp.float32) * scale,   # wv
        jax.random.normal(keys[7], (1, C), jnp.float32) * scale,   # bv
        jax.random.normal(keys[8], (C, C), jnp.float32) * scale,   # wp
        jax.random.normal(keys[9], (1, C), jnp.float32) * scale,   # bp
    )

    ref = cross_attention_ref(x, enc, params, n_head)

    # Full-precision attention path: tight check of the kernel's math
    # (tolerance covers the approx EUP reciprocal used for softmax norm).
    out_f32 = jax.block_until_ready(
        cross_attention(x, enc, params, n_head, attn_dtype=jnp.float32))
    assert out_f32.shape == (B, T, C)
    assert jnp.allclose(out_f32, ref, atol=5e-3, rtol=5e-3), "f32 path mismatch"

    # Default bf16-MXU attention path (perf configuration): looser tolerance
    # accounts for bf16 score/PV operands (f32 accumulation).
    out = jax.block_until_ready(cross_attention(x, enc, params, n_head))
    assert out.shape == (B, T, C)
    assert jnp.allclose(out, ref, atol=3e-2, rtol=3e-2), "bf16 path mismatch"

    print("KERNEL_OK")
</pallas_src>

<mosaic_0001>
module attributes {stable_mosaic.version = 11 : i64} {
  func.func @cross_attention_kernel(%arg0: i32, %arg1: i32, %arg2: memref<2x8x32xf32, #tpu.memory_space<vmem>>, %arg3: memref<2x16x32xf32, #tpu.memory_space<vmem>>, %arg4: memref<1x32x8xf32, #tpu.memory_space<vmem>>, %arg5: memref<1x1x8xf32, #tpu.memory_space<vmem>>, %arg6: memref<1x32x16xf32, #tpu.memory_space<vmem>>, %arg7: memref<1x1x16xf32, #tpu.memory_space<vmem>>, %arg8: memref<1x8x32xf32, #tpu.memory_space<vmem>>, %arg9: memref<1x32xf32, #tpu.memory_space<vmem>>, %arg10: memref<2x8x32xf32, #tpu.memory_space<vmem>>, %arg11: memref<16x32xf32, #tpu.memory_space<vmem>>) attributes {dimension_semantics = [#tpu.dimension_semantics<parallel>, #tpu.dimension_semantics<arbitrary>], iteration_bounds = array<i64: 1, 4>, scalar_prefetch = 0 : i64, scratch_operands = 1 : i64, tpu.core_type = #tpu.core_type<tc>, window_params = [{transform_indices = @transform_0, window_bounds = array<i64: 2, 8, 32>}, {transform_indices = @transform_1, window_bounds = array<i64: 2, 16, 32>}, {transform_indices = @transform_2, window_bounds = array<i64: 1, 32, 8>}, {transform_indices = @transform_3, window_bounds = array<i64: 1, 1, 8>}, {transform_indices = @transform_4, window_bounds = array<i64: 1, 32, 16>}, {transform_indices = @transform_5, window_bounds = array<i64: 1, 1, 16>}, {transform_indices = @transform_6, window_bounds = array<i64: 1, 8, 32>}, {pipeline_mode = #tpu.pipeline_mode<synchronous>, transform_indices = @transform_7, window_bounds = array<i64: 1, 32>}, {transform_indices = @transform_8, window_bounds = array<i64: 2, 8, 32>}]} {
    %c0_i32 = arith.constant 0 : i32
    %0 = arith.cmpi eq, %arg1, %c0_i32 : i32
    %1 = arith.extui %0 : i1 to i32
    %c0_i32_0 = arith.constant 0 : i32
    %2 = arith.cmpi ne, %1, %c0_i32_0 : i32
    scf.if %2 {
      %c0_33 = arith.constant 0 : index
      %c0_34 = arith.constant 0 : index
      %50 = vector.load %arg9[%c0_33, %c0_34] : memref<1x32xf32, #tpu.memory_space<vmem>>, vector<1x32xf32>
      %51 = vector.shape_cast %50 : vector<1x32xf32> to vector<1x32xf32>
      %52 = vector.broadcast %51 : vector<1x32xf32> to vector<16x32xf32>
      %c0_35 = arith.constant 0 : index
      %c0_36 = arith.constant 0 : index
      %53 = vector.load %arg11[%c0_35, %c0_36] : memref<16x32xf32, #tpu.memory_space<vmem>>, vector<16x32xf32>
      tpu.vector_store %arg11[%c0_35, %c0_36], %52 {strides = array<i32>} : memref<16x32xf32, #tpu.memory_space<vmem>>, vector<16x32xf32>,
    } else {
    }
    %c0 = arith.constant 0 : index
    %c0_1 = arith.constant 0 : index
    %c0_2 = arith.constant 0 : index
    %3 = vector.load %arg2[%c0, %c0_1, %c0_2] : memref<2x8x32xf32, #tpu.memory_space<vmem>>, vector<2x8x32xf32>
    %4 = vector.shape_cast %3 : vector<2x8x32xf32> to vector<16x32xf32>
    %c0_3 = arith.constant 0 : index
    %c0_4 = arith.constant 0 : index
    %c0_5 = arith.constant 0 : index
    %5 = vector.load %arg3[%c0_3, %c0_4, %c0_5] : memref<2x16x32xf32, #tpu.memory_space<vmem>>, vector<2x16x32xf32>
    %6 = vector.shape_cast %5 : vector<2x16x32xf32> to vector<32x32xf32>
    %c0_6 = arith.constant 0 : index
    %c0_7 = arith.constant 0 : index
    %c0_8 = arith.constant 0 : index
    %7 = vector.load %arg4[%c0_6, %c0_7, %c0_8] : memref<1x32x8xf32, #tpu.memory_space<vmem>>, vector<1x32x8xf32>
    %8 = vector.shape_cast %7 : vector<1x32x8xf32> to vector<32x8xf32>
    %cst = arith.constant dense<0.000000e+00> : vector<16x8xf32>
    %9 = tpu.matmul %4, %8, %cst {dimension_numbers = #tpu.dot_dimension_numbers<[1], [0], [0], [1], [0, 0, 1, 1], [], []>} : vector<16x32xf32>, vector<32x8xf32>, vector<16x8xf32> -> vector<16x8xf32>
    %c0_9 = arith.constant 0 : index
    %c0_10 = arith.constant 0 : index
    %c0_11 = arith.constant 0 : index
    %10 = vector.load %arg5[%c0_9, %c0_10, %c0_11] : memref<1x1x8xf32, #tpu.memory_space<vmem>>, vector<1x1x8xf32>
    %11 = vector.shape_cast %10 : vector<1x1x8xf32> to vector<1x8xf32>
    %12 = vector.broadcast %11 : vector<1x8xf32> to vector<16x8xf32>
    %13 = arith.addf %9, %12 : vector<16x8xf32>
    %c0_12 = arith.constant 0 : index
    %c0_13 = arith.constant 0 : index
    %c0_14 = arith.constant 0 : index
    %14 = vector.load %arg6[%c0_12, %c0_13, %c0_14] : memref<1x32x16xf32, #tpu.memory_space<vmem>>, vector<1x32x16xf32>
    %15 = vector.shape_cast %14 : vector<1x32x16xf32> to vector<32x16xf32>
    %cst_15 = arith.constant dense<0.000000e+00> : vector<32x16xf32>
    %16 = tpu.matmul %6, %15, %cst_15 {dimension_numbers = #tpu.dot_dimension_numbers<[1], [0], [0], [1], [0, 0, 1, 1], [], []>} : vector<32x32xf32>, vector<32x16xf32>, vector<32x16xf32> -> vector<32x16xf32>
    %c0_16 = arith.constant 0 : index
    %c0_17 = arith.constant 0 : index
    %c0_18 = arith.constant 0 : index
    %17 = vector.load %arg7[%c0_16, %c0_17, %c0_18] : memref<1x1x16xf32, #tpu.memory_space<vmem>>, vector<1x1x16xf32>
    %18 = vector.shape_cast %17 : vector<1x1x16xf32> to vector<1x16xf32>
    %19 = vector.broadcast %18 : vector<1x16xf32> to vector<32x16xf32>
    %20 = arith.addf %16, %19 : vector<32x16xf32>
    %21 = vector.extract_strided_slice %20 {offsets = [0, 0], sizes = [32, 8], strides = [1, 1]} : vector<32x16xf32> to vector<32x8xf32>
    %22 = vector.extract_strided_slice %20 {offsets = [0, 8], sizes = [32, 8], strides = [1, 1]} : vector<32x16xf32> to vector<32x8xf32>
    %23 = vector.shape_cast %13 : vector<16x8xf32> to vector<2x8x8xf32>
    %24 = vector.shape_cast %21 : vector<32x8xf32> to vector<2x16x8xf32>
    %25 = vector.shape_cast %22 : vector<32x8xf32> to vector<2x16x8xf32>
    "tpu.trace_start"() <{level = 10 : i32, message = "btd,bsd->bts"}> : () -> ()
    %cst_19 = arith.constant dense<0.000000e+00> : vector<2x8x16xf32>
    %26 = tpu.matmul %23, %24, %cst_19 {dimension_numbers = #tpu.dot_dimension_numbers<[2], [2], [1], [1], [0, 0, 0, 1, 1, 1], [0], [0]>} : vector<2x8x8xf32>, vector<2x16x8xf32>, vector<2x8x16xf32> -> vector<2x8x16xf32>
    "tpu.trace_stop"() : () -> ()
    %cst_20 = arith.constant 0.353553385 : f32
    %27 = vector.broadcast %cst_20 : f32 to vector<2x8x16xf32>
    %28 = arith.mulf %26, %27 : vector<2x8x16xf32>
    %cst_21 = arith.constant dense<0xFF800000> : vector<2x8xf32>
    %29 = vector.multi_reduction <maximumf>, %28, %cst_21 [2] : vector<2x8x16xf32> to vector<2x8xf32>
    %30 = vector.shape_cast %29 : vector<2x8xf32> to vector<2x8x1xf32>
    %31 = vector.broadcast %30 : vector<2x8x1xf32> to vector<2x8x16xf32>
    %32 = arith.subf %28, %31 : vector<2x8x16xf32>
    %33 = math.exp %32 : vector<2x8x16xf32>
    %cst_22 = arith.constant dense<0.000000e+00> : vector<2x8xf32>
    %34 = vector.multi_reduction <add>, %33, %cst_22 [2] : vector<2x8x16xf32> to vector<2x8xf32>
    %35 = vector.shape_cast %34 : vector<2x8xf32> to vector<2x8x1xf32>
    %36 = tpu.reciprocal %35 {approx = true} : vector<2x8x1xf32> -> vector<2x8x1xf32>
    %37 = vector.broadcast %36 : vector<2x8x1xf32> to vector<2x8x16xf32>
    %38 = arith.mulf %33, %37 : vector<2x8x16xf32>
    "tpu.trace_start"() <{level = 10 : i32, message = "bts,bsd->btd"}> : () -> ()
    %cst_23 = arith.constant dense<0.000000e+00> : vector<2x8x8xf32>
    %39 = tpu.matmul %38, %25, %cst_23 {dimension_numbers = #tpu.dot_dimension_numbers<[2], [1], [1], [2], [0, 0, 0, 1, 1, 2], [0], [0]>} : vector<2x8x16xf32>, vector<2x16x8xf32>, vector<2x8x8xf32> -> vector<2x8x8xf32>
    "tpu.trace_stop"() : () -> ()
    %c0_24 = arith.constant 0 : index
    %c0_25 = arith.constant 0 : index
    %40 = vector.load %arg11[%c0_24, %c0_25] : memref<16x32xf32, #tpu.memory_space<vmem>>, vector<16x32xf32>
    %41 = vector.shape_cast %39 : vector<2x8x8xf32> to vector<16x8xf32>
    %c0_26 = arith.constant 0 : index
    %c0_27 = arith.constant 0 : index
    %c0_28 = arith.constant 0 : index
    %42 = vector.load %arg8[%c0_26, %c0_27, %c0_28] : memref<1x8x32xf32, #tpu.memory_space<vmem>>, vector<1x8x32xf32>
    %43 = vector.shape_cast %42 : vector<1x8x32xf32> to vector<8x32xf32>
    %cst_29 = arith.constant dense<0.000000e+00> : vector<16x32xf32>
    %44 = tpu.matmul %41, %43, %cst_29 {dimension_numbers = #tpu.dot_dimension_numbers<[1], [0], [0], [1], [0, 0, 1, 1], [], []>} : vector<16x8xf32>, vector<8x32xf32>, vector<16x32xf32> -> vector<16x32xf32>
    %45 = arith.addf %40, %44 : vector<16x32xf32>
    %c0_30 = arith.constant 0 : index
    %c0_31 = arith.constant 0 : index
    %46 = vector.load %arg11[%c0_30, %c0_31] : memref<16x32xf32, #tpu.memory_space<vmem>>, vector<16x32xf32>
    tpu.vector_store %arg11[%c0_30, %c0_31], %45 {strides = array<i32>} : memref<16x32xf32, #tpu.memory_space<vmem>>, vector<16x32xf32>,
    %c3_i32 = arith.constant 3 : i32
    %47 = arith.cmpi eq, %arg1, %c3_i32 : i32
    %48 = arith.extui %47 : i1 to i32
    %c0_i32_32 = arith.constant 0 : i32
    %49 = arith.cmpi ne, %48, %c0_i32_32 : i32
    scf.if %49 {
      %c0_33 = arith.constant 0 : index
      %c0_34 = arith.constant 0 : index
      %50 = vector.load %arg11[%c0_33, %c0_34] : memref<16x32xf32, #tpu.memory_space<vmem>>, vector<16x32xf32>
      %51 = vector.shape_cast %50 : vector<16x32xf32> to vector<2x8x32xf32>
      %c0_35 = arith.constant 0 : index
      %c0_36 = arith.constant 0 : index
      %c0_37 = arith.constant 0 : index
      %52 = vector.load %arg10[%c0_35, %c0_36, %c0_37] : memref<2x8x32xf32, #tpu.memory_space<vmem>>, vector<2x8x32xf32>
      tpu.vector_store %arg10[%c0_35, %c0_36, %c0_37], %51 {strides = array<i32>} : memref<2x8x32xf32, #tpu.memory_space<vmem>>, vector<2x8x32xf32>,
    } else {
    }
    return
  }
  func.func @transform_0(%arg0: i32, %arg1: i32) -> (i32, i32, i32) {
    %c0_i32 = arith.constant 0 : i32
    %c0_i32_0 = arith.constant 0 : i32
    %c0_i32_1 = arith.constant 0 : i32
    return %arg0, %c0_i32, %c0_i32_0 : i32, i32, i32
  }
  func.func @transform_1(%arg0: i32, %arg1: i32) -> (i32, i32, i32) {
    %c0_i32 = arith.constant 0 : i32
    %c0_i32_0 = arith.constant 0 : i32
    %c0_i32_1 = arith.constant 0 : i32
    return %arg0, %c0_i32, %c0_i32_0 : i32, i32, i32
  }
  func.func @transform_2(%arg0: i32, %arg1: i32) -> (i32, i32, i32) {
    %c0_i32 = arith.constant 0 : i32
    %c0_i32_0 = arith.constant 0 : i32
    %c0_i32_1 = arith.constant 0 : i32
    return %arg1, %c0_i32, %c0_i32_0 : i32, i32, i32
  }
  func.func @transform_3(%arg0: i32, %arg1: i32) -> (i32, i32, i32) {
    %c0_i32 = arith.constant 0 : i32
    %c0_i32_0 = arith.constant 0 : i32
    %c0_i32_1 = arith.constant 0 : i32
    return %arg1, %c0_i32, %c0_i32_0 : i32, i32, i32
  }
  func.func @transform_4(%arg0: i32, %arg1: i32) -> (i32, i32, i32) {
    %c0_i32 = arith.constant 0 : i32
    %c0_i32_0 = arith.constant 0 : i32
    %c0_i32_1 = arith.constant 0 : i32
    return %arg1, %c0_i32, %c0_i32_0 : i32, i32, i32
  }
  func.func @transform_5(%arg0: i32, %arg1: i32) -> (i32, i32, i32) {
    %c0_i32 = arith.constant 0 : i32
    %c0_i32_0 = arith.constant 0 : i32
    %c0_i32_1 = arith.constant 0 : i32
    return %arg1, %c0_i32, %c0_i32_0 : i32, i32, i32
  }
  func.func @transform_6(%arg0: i32, %arg1: i32) -> (i32, i32, i32) {
    %c0_i32 = arith.constant 0 : i32
    %c0_i32_0 = arith.constant 0 : i32
    %c0_i32_1 = arith.constant 0 : i32
    return %arg1, %c0_i32, %c0_i32_0 : i32, i32, i32
  }
  func.func @transform_7(%arg0: i32, %arg1: i32) -> (i32, i32) {
    %c0_i32 = arith.constant 0 : i32
    %c0_i32_0 = arith.constant 0 : i32
    %c0_i32_1 = arith.constant 0 : i32
    return %c0_i32, %c0_i32_0 : i32, i32
  }
  func.func @transform_8(%arg0: i32, %arg1: i32) -> (i32, i32, i32) {
    %c0_i32 = arith.constant 0 : i32
    %c0_i32_0 = arith.constant 0 : i32
    %c0_i32_1 = arith.constant 0 : i32
    return %arg0, %c0_i32, %c0_i32_0 : i32, i32, i32
  }
}

</mosaic_0001>

<bundles_post_ra>
// kernel: tpu_custom_call.1
= control target key start
LH: loop header
LB: loop body
LE: loop exit
PB: predicated region body
PF: predicated region fallthrough
CT: control target
= control target key end

     0   :  { %13 = vsyncpa [#allocation4], 0  ;;  %s1051_s27 = smov 0   ;;  %s1053_s28 = smov 0   ;;  %s1175_s0 = inlined_call_operand.vmem [shape: f32[2,8,32], index: 0, kind: input, shape index: {}]   ;;  %s1176_s1 = inlined_call_operand.vmem [shape: f32[2,16,32], index: 1, kind: input, shape index: {}]   ;;  %s1177_s2 = inlined_call_operand.vmem [shape: f32[4,32,8], index: 2, kind: input, shape index: {}]   ;;  %s1178_s3 = inlined_call_operand.vmem [shape: f32[4,1,8], index: 3, kind: input, shape index: {}]   ;;  %s1179_s4 = inlined_call_operand.vmem [shape: f32[4,32,16], index: 4, kind: input, shape index: {}]   ;;  %s1180_s5 = inlined_call_operand.vmem [shape: f32[4,1,16], index: 5, kind: input, shape index: {}]   ;;  %s1181_s6 = inlined_call_operand.vmem [shape: f32[4,8,32], index: 6, kind: input, shape index: {}]   ;;  %s1182_s7 = inlined_call_operand.vmem [shape: f32[1,32], index: 7, kind: input, shape index: {}]   ;;  %s1183_s8 = inlined_call_operand.hbm [shape: f32[2,8,32], index: 8, kind: output, shape index: {}]  }
   0x1   :  { %s1055_s29 = smov 0  }
   0x2 LB: > { %s28_s9 = sadd.s32 1, %s996_s28  ;;  %p853_p1 = scmp.ge.s32.totalorder %s1000_s29, 1  ;;  %s1000_s29 = sphi %s1055_s29, %s19_s29   ;;  %s996_s28 = sphi %s1053_s28, %s1186_s28   ;;  %s992_s27 = sphi %s1051_s27, %s1185_s27  }
   0x3   : > { %p29_p0 = scmp.ge.s32.totalorder %s28_s9, 4  ;;  %p333_p2 = scmp.lt.s32.totalorder %s1000_s29, 5 }
   0x5   : > { %s1188_s9 = smov (%p29_p0, %s28_s9), 0  ;;  %p334_p3 = pnand %p853_p1, %p333_p2 }
   0x6   : > { %p401_p4 = scmp.lt.s32.totalorder (!%p334_p3), %s992_s27, 3  ;;  %p859_p5 = scmp.ne.s32.totalorder (!%p334_p3), %s992_s27, 0 }
   0x7   : > { %337 = sbr.rel (%p334_p3) target bundleno = 864 (0x360), region = 52 }
   0xc   : > { %s1074_s10 = scalar_select %p401_p4, %s992_s27, 3 }
   0xd   : > { %425 = sbr.rel (%p859_p5) target bundleno = 21 (0x15), region = 56 }
   0xe   : > { %s881_s11 = sshll.u32 %s1074_s10, 5  ;;  %s408_s14 = scalar_lea.vmem %s1178_s3, %s1074_s10 }
   0xf   : > { %s1084_s17 = scalar_lea.vmem %s1177_s2, %s881_s11  ;;  %s413_s20 = scalar_lea.vmem %s1179_s4, %s881_s11 }
  0x10   : > { %s416_s23 = scalar_lea.vmem %s1180_s5, %s1074_s10  ;;  %s858_s24 = sshll.u32 %s1074_s10, 3 }
  0x11   : > { %s1097_s30 = scalar_lea.vmem %s1181_s6, %s858_s24 }
  0x12   : > { %v925_v0 = vld [vmem:[%s1182_s7] ss:$0 sm:$0xff]  ;;  %vm430_vm0 = vcmask 261120  }
  0x13   : > { %431 = vst.msk [vmem:[#allocation2] sm:$0xff] %vm430_vm0, %v925_v0 }
  0x14   : > { %432 = vst.msk [vmem:[#allocation2 + $0x8] sm:$0xff] %vm430_vm0, %v925_v0 }
  0x15 PF: > { %v480_v1 = vld [vmem:[%s413_s20 + $0x18] sm:$0xff]  ;;  %v479_v2 = vld [vmem:[%s413_s20 + $0x10] sm:$0xff]  ;;  %v478_v4 = vld [vmem:[%s413_s20 + $0x8] sm:$0xff]  ;;  %vm447_vm1 = vcmask 261120   ;;  %vm526_vm2 = vcmask 64512   ;;  %vm587_vm3 = vcmask 130048  }
  0x16   : > { %509 = vmatpush.msra.mxu1 %v480_v1  ;;  %887 = vmatpush.msra.mxu3 %v480_v1  ;;  %v442_v3 = vld [vmem:[%s1084_s17 + $0x18] sm:$0xff]  ;;  %v441_v5 = vld [vmem:[%s1084_s17 + $0x10] sm:$0xff]  ;;  %v440_v6 = vld [vmem:[%s1084_s17 + $0x8] sm:$0xff]  ;;  %s1002_s10 = smov 120   ;;  %p876_p6 = scmp.ne.s32.totalorder %s992_s27, 3 }
  0x17   : > { %466 = vmatpush.msra.mxu0 %v442_v3  ;;  %883 = vmatpush.msra.mxu2 %v442_v3  ;;  %v477_v7 = vld [vmem:[%s413_s20] sm:$0xff]  ;;  %v438_v9 = vld [vmem:[%s1176_s1 + $0x18] sm:$0xff]  ;;  %v434_v12 = vld [vmem:[%s1175_s0 + $0x8] sm:$0xff] }
  0x18   : > { %510 = vmatpush.msra.mxu1 %v479_v2  ;;  %888 = vmatpush.msra.mxu3 %v479_v2  ;;  %v435_v8 = vld [vmem:[%s1176_s1] sm:$0xff]  ;;  %v436_v13 = vld [vmem:[%s1176_s1 + $0x8] sm:$0xff]  ;;  %v437_v14 = vld [vmem:[%s1176_s1 + $0x10] sm:$0xff] }
  0x19   : > { %467 = vmatpush.msra.mxu0 %v441_v5  ;;  %884 = vmatpush.msra.mxu2 %v441_v5  ;;  %v439_v10 = vld [vmem:[%s1084_s17] sm:$0xff] }
  0x1a   : > { %511 = vmatpush.msra.mxu1 %v478_v4  ;;  %889 = vmatpush.msra.mxu3 %v478_v4  ;;  %v433_v11 = vld [vmem:[%s1175_s0] sm:$0xff] }
  0x1b   : > { %468 = vmatpush.msra.mxu0 %v440_v6  ;;  %885 = vmatpush.msra.mxu2 %v440_v6  ;;  %v936_v16 = vld [vmem:[%s416_s23] ss:$0 sm:$0xff]  ;;  %v669_v1 = vld [vmem:[#allocation2 + $0x8] sm:$0xff] }
  0x1c   : > { %512 = vmatpush.msra.mxu1 %v477_v7  ;;  %890 = vmatpush.msra.mxu3 %v477_v7  ;;  %v937_v22 = vld [vmem:[%s408_s14] ss:$0 sm:$0xff] }
  0x1d   : > { %862 = vmatmul.msk.f32.vlgmr.msra.gmra.mxu1 %vm447_vm1, %v435_v8  ;;  %865 = vmatmul.msk.f32.vlgmr.msra.gmra.mxu3 %vm447_vm1, %v438_v9  ;;  %v670_v59 = vld [vmem:[%s1097_s30] sm:$0xff] }
  0x1e   : > { %469 = vmatpush.msra.mxu0 %v439_v10  ;;  %886 = vmatpush.msra.mxu2 %v439_v10  ;;  %v668_v62 = vld [vmem:[#allocation2] sm:$0xff] }
  0x1f   : > { %860 = vmatmul.msk.f32.vlgmr.msra.gmra.mxu0 %vm447_vm1, %v433_v11  ;;  %861 = vmatmul.msk.f32.vlgmr.msra.gmra.mxu2 %vm447_vm1, %v434_v12 }
  0x20   : > { %692 = vmatpush.msrb.mxu0 %v670_v59 }
  0x25   : > { %863 = vmatmul.msk.f32.gmra.mxu1 %vm447_vm1, %v436_v13 }
  0x2d   : > { %864 = vmatmul.msk.f32.gmra.mxu1 %vm447_vm1, %v437_v14 }
  0x9a   : > { %v514_v15 = vpop.f32.mrf.mxu1 }
  0x9b   : > { %v515_v20 = vadd.f32 %v936_v16, %v514_v15 }
  0x9c   : > { %v471_v24 = vpop.f32.mrf.mxu0 }
  0x9d   : > { %v472_v25 = vadd.f32 %v937_v22, %v471_v24 }
  0xa0   : > { %v523_v17 = vpop.f32.mrf.mxu3 }
  0xa1   : > { %v524_v18 = vadd.f32 %v936_v16, %v523_v17 }
  0xa2   : > { %v517_v19 = vpop.f32.mrf.mxu1  ;;  %v474_v26 = vpop.f32.mrf.mxu2 }
  0xa3   : > { %v518_v21 = vadd.f32 %v936_v16, %v517_v19  ;;  %869 = vmatpush.xpose.msk.msrb.mxu3 %vm526_vm2, %v524_v18  ;;  %v475_v29 = vadd.f32 %v937_v22, %v474_v26 }
  0xa5   : > { %v926_v23 = vpack.i.bf16 %v515_v20, %v518_v21  ;;  %866 = vmatpush.xpose.msk.msrb.mxu2 %vm526_vm2, %v518_v21 }
  0xa9   : > { %867 = vmatpush.xpose.msk.msrb.mxu2 %vm526_vm2, %v515_v20 }
  0xaa   : > { %v520_v27 = vpop.f32.mrf.mxu1 }
  0xab   : > { %v521_v28 = vadd.f32 %v936_v16, %v520_v27 }
  0xac   : > { %868 = vmatmul.msk.f32.vlgmr.msrb.gmra.mxu2 %vm526_vm2, %v472_v25 }
  0xad   : > { %v931_v30 = vpack.i.bf16 %v521_v28, %v524_v18  ;;  %870 = vmatpush.xpose.msk.msrb.mxu3 %vm526_vm2, %v521_v28 }
  0xb0   : > { %871 = vmatmul.msk.f32.vlgmr.msrb.gmra.mxu3 %vm526_vm2, %v475_v29 }
 0x12f   : > { %v553_v31 = vpop.f32.mrf.mxu2 }
 0x130   : > { %v585_v32 = vmul.f32 0.35355338, %v553_v31 }
 0x132   : > { %v588_v33 = vsel %vm587_vm3, %v585_v32, -inf }
 0x133   : > { %589 = vmax.xlane.f32.xlu0 %v588_v33  ;;  %v582_v34 = vpop.f32.mrf.mxu3 }
 0x134   : > { %v586_v35 = vmul.f32 0.35355338, %v582_v34 }
 0x136   : > { %v591_v36 = vsel %vm587_vm3, %v586_v35, -inf }
 0x13b   : > { %592 = vmax.xlane.f32.xlu0 %v591_v36 }
 0x1a6   : > { %v590_v37 = vpop.xlane.xlu0 %589 }
 0x1a7   : > { %v594_v38 = vsub.f32 %v585_v32, %v590_v37 }
 0x1a9   : > { %v596_v39 = vmul.f32 1.442695, %v594_v38 }
 0x1ab   : > { %938 = vpow2.f32 %v596_v39 }
 0x1ae   : > { %v593_v40 = vpop.xlane.xlu0 %592 }
 0x1af   : > { %v595_v41 = vsub.f32 %v586_v35, %v593_v40 }
 0x1b1   : > { %v939_v42 = vpop.eup %938  ;;  %v598_v43 = vmul.f32 1.442695, %v595_v41 }
 0x1b2   : > { %v600_v44 = vsel %vm587_vm3, %v939_v42, 0.0 }
 0x1b3   : > { %940 = vpow2.f32 %v598_v43  ;;  %601 = vadd.xlane.f32.xlu1 %v600_v44 }
 0x1b9   : > { %v941_v45 = vpop.eup %940 }
 0x1ba   : > { %v603_v46 = vsel %vm587_vm3, %v941_v45, 0.0 }
 0x1bb   : > { %604 = vadd.xlane.f32.xlu2 %v603_v46 }
 0x1cc   : > { %927 = vrot.lane.b32.xlu1 %v926_v23, %s1002_s10 }
 0x1d3   : > { %932 = vrot.lane.b32.xlu2 %v931_v30, %s1002_s10 }
 0x226   : > { %v602_v48 = vpop.xlane.xlu1 %601 }
 0x22e   : > { %v605_v47 = vpop.xlane.xlu2 %604 }
 0x22f   : > { %942 = vrcp.f32 %v605_v47 }
 0x230   : > { %944 = vrcp.f32 %v602_v48 }
 0x235   : > { %v943_v50 = vpop.eup %942 }
 0x236   : > { %v933_v49 = vpop.permute.xlu2 %932  ;;  %v609_v53 = vmul.f32 %v943_v50, %v941_v45  ;;  %v945_v55 = vpop.eup %944 }
 0x237   : > { %v934_v51 = vunpack.i.l.bf16 %v933_v49  ;;  %v935_v52 = vunpack.i.h.bf16 %v933_v49  ;;  %v608_v58 = vmul.f32 %v945_v55, %v939_v42 }
 0x239   : > { %662 = vmatpush.msra.mxu3 %v934_v51 }
 0x23b   : > { %663 = vmatpush.msra.mxu3 %v935_v52 }
 0x23c   : > { %873 = vmatmul.msk.f32.vlgmr.msra.gmra.mxu3 %vm587_vm3, %v609_v53 }
 0x23e   : > { %v928_v54 = vpop.permute.xlu1 %927 }
 0x23f   : > { %v929_v56 = vunpack.i.l.bf16 %v928_v54  ;;  %v930_v57 = vunpack.i.h.bf16 %v928_v54 }
 0x241   : > { %633 = vmatpush.msra.mxu2 %v929_v56 }
 0x243   : > { %634 = vmatpush.msra.mxu2 %v930_v57 }
 0x244   : > { %872 = vmatmul.msk.f32.vlgmr.msra.gmra.mxu2 %vm587_vm3, %v608_v58 }
 0x2bf   : > { %v665_v61 = vpop.f32.mrf.mxu3 }
 0x2c7   : > { %v636_v60 = vpop.f32.mrf.mxu2 }
 0x2c8   : > { %874 = vmatmul.msk.f32.vlgmr.msrb.gmra.mxu0 %vm526_vm2, %v636_v60 }
 0x2d0   : > { %875 = vmatmul.msk.f32.gmra.mxu0 %vm526_vm2, %v665_v61 }
 0x345   : > { %v694_v63 = vpop.f32.mrf.mxu0 }
 0x346   : > { %v700_v0 = vadd.f32 %v694_v63, %v668_v62 }
 0x348   : > { %702 = vst.msk [vmem:[#allocation2] sm:$0xff] %vm447_vm1, %v700_v0 }
 0x34c   : > { %707 = sbr.rel (%p876_p6) target bundleno = 857 (0x359), region = 60 }
 0x34d   : > { %v697_v2 = vpop.f32.mrf.mxu0 }
 0x34e   : > { %v701_v3 = vadd.f32 %v697_v2, %v669_v1 }
 0x350   : > { %703 = vst.msk [vmem:[#allocation2 + $0x8] sm:$0xff] %vm447_vm1, %v701_v3 }
 0x351   : > { %v708_v4 = vld [vmem:[#allocation2] sm:$0xff] }
 0x352   : > { %710 = vst.msk [vmem:[#allocation3] sm:$0xff] %vm447_vm1, %v708_v4 }
 0x357   : > { %v709_v5 = vld [vmem:[#allocation2 + $0x8] sm:$0xff] }
 0x358   : > { %711 = vst.msk [vmem:[#allocation3 + $0x8] sm:$0xff] %vm447_vm1, %v709_v5 }
 0x359 PF: > { %s1184_s30 = sadd.s32 4294967295, %s1000_s29   ;;  %s722_s16 = sshll.u32 %s1183_s8, 4  ;;  %s723_s16 = int_to_ptr.hbm [resolvable:$true] %s722_s16 }
 0x35a   : > { %p895_p7 = scmp.eq.s32.totalorder %s1184_s30, 3  ;;  %s1003_s18 = smov [#allocation3]  }
 0x35b   : > { %s720_s19 = sshll.u32 %s1003_s18, 4  ;;  %s1004_s27 = smov 128   ;;  %s721_s19 = int_to_ptr.vmem [resolvable:$true] %s720_s19 }
 0x35c   : > { %s1005_s20 = smov 8  }
 0x35d   : > { %892 = dma.vmem_to_hbm [thread:$0]  (%p895_p7), %s721_s19, 256, %s723_s16, [#allocation4], %s1004_s27, %s1004_s27, %s1005_s20  }
 0x35e   : > { %987 = dma.done.wait (%p895_p7), [#allocation4], 256  }
 0x35f   : > { %989 = vsyncadd (%p895_p7), [#allocation4], 4294967040 }
 0x360 PF: > { %s19_s29 = sadd.s32 1, %s1000_s29   ;;  %s1185_s27 = smov %s996_s28 }
 0x361   : > { %p16_p8 = scmp.ge.s32.totalorder %s19_s29, 6   ;;  %s1186_s28 = smov %s1188_s9 }
 0x363   :  { %18 = sbr.rel (!%p16_p8) target bundleno = 2 (0x2), region = 106 }
 0x368   :  { %739 = vsyncpa [#allocation4], 1 }
 0x369   :  { %741 = vsyncpa [#allocation4 + $0x1], 1 }

</bundles_post_ra>
